<compile_context>
chip_gen: v6e
topology: v6e:2x2x1
jax: 0.10.0
libtpu: 0.0.40
codegen_flags: <defaults>
</compile_context>

<pallas_src>
import jax
import jax.numpy as jnp
from jax.experimental import pallas as pl
from jax.experimental.pallas import tpu as pltpu

INPUT_DIM = 2
HIDDEN = 100
OUTPUT_DIM = 2

HIDDEN_PAD = 128    # 100 -> 128 (lane / contraction aligned)
OUT_SUB_PAD = 8     # 2   -> 8 sublanes (output rows in transposed layout)
LANE = 128


def _round_up(x, m):
    return pl.cdiv(x, m) * m


def _choose_tiling(batch, *, tile_max=2048, align=LANE):
    """Pick (tile_m, n_steps, b_pad): lane-aligned batch tiles, minimal padding,
    and >=2 grid steps when the batch spans >=2 lane tiles (v7x megacore)."""
    b_aligned = _round_up(max(int(batch), 1), align)
    tile_max = max(align, min(int(tile_max), b_aligned))
    n_min = pl.cdiv(b_aligned, tile_max)
    if b_aligned >= 2 * align:
        n_min = max(n_min, 2)          # let both v7x TensorCores do work
    best = None
    for n in range(n_min, n_min + 8):  # small search to avoid near-2x tail padding
        tile = _round_up(pl.cdiv(b_aligned, n), align)
        steps = pl.cdiv(b_aligned, tile)
        cand = (steps * tile, steps, tile)   # minimize padded size, then step count
        if best is None or cand < best:
            best = cand
        if tile == align:
            break
    b_pad, n_steps, tile_m = best
    return tile_m, n_steps, b_pad


def mlp_kernel(x_ref, w1_ref, b1_ref, w2_ref, b2_ref, w3_ref, b3_ref, o_ref):
    xT = x_ref[...]            # (INPUT_DIM, tile_m) fp32, batch on lanes
    w1T = w1_ref[...]          # (HIDDEN_PAD, INPUT_DIM) fp32

    # ---- Layer 1: K = INPUT_DIM (=2) contraction -> VPU outer-product FMAs.
    # An MXU matmul would pad the contraction to 128 and waste ~98% of the array.
    acc = w1T[:, 0:1] * xT[0:1, :]                    # (HIDDEN_PAD, tile_m)
    for k in range(1, xT.shape[0]):                   # unrolled at trace time
        acc = acc + w1T[:, k:k + 1] * xT[k:k + 1, :]
    h1 = jnp.maximum(acc + b1_ref[...], 0.0)          # fp32

    # ---- Layer 2: clean 128x128 MXU matmul, bf16 operands, fp32 accumulate.
    h2 = jnp.dot(w2_ref[...], h1.astype(w2_ref.dtype),
                 preferred_element_type=jnp.float32) + b2_ref[...]
    h2 = jnp.maximum(h2, 0.0)

    # ---- Layer 3: (8,128) @ (128,tile_m) MXU; lane-dense unmasked output store.
    out = jnp.dot(w3_ref[...], h2.astype(w3_ref.dtype),
                  preferred_element_type=jnp.float32) + b3_ref[...]
    o_ref[...] = out.astype(o_ref.dtype)


def mlp_forward(x, padded_params, *, tile_max=2048):
    """x: (B, INPUT_DIM). padded_params: transposed/padded (w1t,b1t,w2t,b2t,w3t,b3t)."""
    w1t, b1t, w2t, b2t, w3t, b3t = padded_params
    x = jnp.asarray(x, jnp.float32)                   # torch.FloatTensor(x) equivalent
    B, in_dim = x.shape
    hidden_pad = w2t.shape[0]
    out_sub = w3t.shape[0]

    tile_m, n_steps, b_pad = _choose_tiling(B, tile_max=tile_max)

    # Batch on lanes: (B, in_dim) -> (in_dim, b_pad), zero-padded tail rows.
    x_t = jnp.pad(x.T, ((0, 0), (0, b_pad - B)))

    flops = 2 * b_pad * hidden_pad * (in_dim + hidden_pad + out_sub)
    bytes_accessed = (x_t.size * 4 + out_sub * b_pad * 4
                      + w1t.size * 4 + w2t.size * w2t.dtype.itemsize
                      + w3t.size * w3t.dtype.itemsize
                      + (b1t.size + b2t.size + b3t.size) * 4)

    out_t = pl.pallas_call(
        mlp_kernel,
        out_shape=jax.ShapeDtypeStruct((out_sub, b_pad), jnp.float32),
        grid=(n_steps,),
        in_specs=[
            pl.BlockSpec((in_dim, tile_m), lambda i: (0, i)),          # xT: tiled over batch lanes
            pl.BlockSpec((hidden_pad, in_dim), lambda i: (0, 0)),      # w1T (resident)
            pl.BlockSpec((hidden_pad, 1), lambda i: (0, 0)),           # b1T
            pl.BlockSpec((hidden_pad, hidden_pad), lambda i: (0, 0)),  # w2T (bf16)
            pl.BlockSpec((hidden_pad, 1), lambda i: (0, 0)),           # b2T
            pl.BlockSpec((out_sub, hidden_pad), lambda i: (0, 0)),     # w3T (bf16)
            pl.BlockSpec((out_sub, 1), lambda i: (0, 0)),              # b3T
        ],
        out_specs=pl.BlockSpec((out_sub, tile_m), lambda i: (0, i)),
        compiler_params=pltpu.CompilerParams(
            dimension_semantics=("parallel",),   # batch tiles shard across v7x's 2 TCs
        ),
        cost_estimate=pl.CostEstimate(
            flops=flops, transcendentals=0, bytes_accessed=bytes_accessed),
    )(x_t, w1t, b1t, w2t, b2t, w3t, b3t)

    # Tiny slice: only OUTPUT_DIM x B useful values live in the (8, b_pad) output.
    return out_t[:OUTPUT_DIM, :B].T


# ----------------------------- parameters ---------------------------------

def xavier_normal(key, fan_in, fan_out):
    # Matches torch.nn.init.xavier_normal_: std = sqrt(2 / (fan_in + fan_out)).
    # Sampled directly in the (in, out) layout used by the fp32 reference (x @ W + b).
    std = (2.0 / (fan_in + fan_out)) ** 0.5
    return jax.random.normal(key, (fan_in, fan_out), dtype=jnp.float32) * std


def init_params(key):
    """Unpadded fp32 parameters, identical init distribution to the PyTorch module."""
    k1, k2, k3 = jax.random.split(key, 3)
    w1 = xavier_normal(k1, INPUT_DIM, HIDDEN)
    b1 = jnp.zeros((HIDDEN,), jnp.float32)
    w2 = xavier_normal(k2, HIDDEN, HIDDEN)
    b2 = jnp.zeros((HIDDEN,), jnp.float32)
    w3 = xavier_normal(k3, HIDDEN, OUTPUT_DIM)
    b3 = jnp.zeros((OUTPUT_DIM,), jnp.float32)
    return (w1, b1, w2, b2, w3, b3)


def pad_params(params, *, mxu_dtype=jnp.bfloat16):
    """Transpose to the kernel's features-on-sublanes layout and zero-pad
    hidden 100->128 and output 2->8 (numerically exact). w2/w3 are stored in
    the MXU operand dtype (bf16 by default, fp32 accumulate in-kernel)."""
    w1, b1, w2, b2, w3, b3 = params
    hp = HIDDEN_PAD - HIDDEN
    op = OUT_SUB_PAD - OUTPUT_DIM
    w1t = jnp.pad(w1.T, ((0, hp), (0, 0))).astype(jnp.float32)     # (128, 2)
    b1t = jnp.pad(b1.reshape(-1, 1), ((0, hp), (0, 0)))            # (128, 1)
    w2t = jnp.pad(w2.T, ((0, hp), (0, hp))).astype(mxu_dtype)      # (128, 128)
    b2t = jnp.pad(b2.reshape(-1, 1), ((0, hp), (0, 0)))            # (128, 1)
    w3t = jnp.pad(w3.T, ((0, op), (0, hp))).astype(mxu_dtype)      # (8, 128)
    b3t = jnp.pad(b3.reshape(-1, 1), ((0, op), (0, 0)))            # (8, 1)
    return (w1t, b1t, w2t, b2t, w3t, b3t)


def mlp_reference(x, params):
    w1, b1, w2, b2, w3, b3 = params
    h1 = jnp.maximum(x @ w1 + b1, 0.0)
    h2 = jnp.maximum(h1 @ w2 + b2, 0.0)
    return h2 @ w3 + b3


if __name__ == "__main__":
    key = jax.random.PRNGKey(0)
    kp, kx = jax.random.split(key)

    params = init_params(kp)
    padded = pad_params(params)          # bf16 MXU operands, fp32 everything else

    batch = 8
    x = jax.random.normal(kx, (batch, INPUT_DIM), dtype=jnp.float32)

    out = mlp_forward(x, padded)
    out = jax.block_until_ready(out)

    ref = mlp_reference(x, params)
    assert out.shape == (batch, OUTPUT_DIM)
    # bf16 MXU operands (fp32 accumulate) -> small deviation from the fp32 reference.
    assert jnp.allclose(out, ref, atol=5e-2, rtol=5e-2)

    print("KERNEL_OK")
</pallas_src>

<mosaic_0001>
module attributes {stable_mosaic.version = 11 : i64} {
  func.func @mlp_kernel(%arg0: i32, %arg1: memref<2x128xf32, #tpu.memory_space<vmem>>, %arg2: memref<128x2xf32, #tpu.memory_space<vmem>>, %arg3: memref<128x1xf32, #tpu.memory_space<vmem>>, %arg4: memref<128x128xbf16, #tpu.memory_space<vmem>>, %arg5: memref<128x1xf32, #tpu.memory_space<vmem>>, %arg6: memref<8x128xbf16, #tpu.memory_space<vmem>>, %arg7: memref<8x1xf32, #tpu.memory_space<vmem>>, %arg8: memref<8x128xf32, #tpu.memory_space<vmem>>) attributes {dimension_semantics = [#tpu.dimension_semantics<parallel>], iteration_bounds = array<i64: 1>, scalar_prefetch = 0 : i64, scratch_operands = 0 : i64, tpu.core_type = #tpu.core_type<tc>, window_params = [{transform_indices = @transform_0, window_bounds = array<i64: 2, 128>}, {pipeline_mode = #tpu.pipeline_mode<synchronous>, transform_indices = @transform_1, window_bounds = array<i64: 128, 2>}, {pipeline_mode = #tpu.pipeline_mode<synchronous>, transform_indices = @transform_2, window_bounds = array<i64: 128, 1>}, {pipeline_mode = #tpu.pipeline_mode<synchronous>, transform_indices = @transform_3, window_bounds = array<i64: 128, 128>}, {pipeline_mode = #tpu.pipeline_mode<synchronous>, transform_indices = @transform_4, window_bounds = array<i64: 128, 1>}, {pipeline_mode = #tpu.pipeline_mode<synchronous>, transform_indices = @transform_5, window_bounds = array<i64: 8, 128>}, {pipeline_mode = #tpu.pipeline_mode<synchronous>, transform_indices = @transform_6, window_bounds = array<i64: 8, 1>}, {transform_indices = @transform_7, window_bounds = array<i64: 8, 128>}]} {
    %c0 = arith.constant 0 : index
    %c0_0 = arith.constant 0 : index
    %0 = vector.load %arg1[%c0, %c0_0] : memref<2x128xf32, #tpu.memory_space<vmem>>, vector<2x128xf32>
    %c0_1 = arith.constant 0 : index
    %c0_2 = arith.constant 0 : index
    %1 = vector.load %arg2[%c0_1, %c0_2] : memref<128x2xf32, #tpu.memory_space<vmem>>, vector<128x2xf32>
    %2 = vector.extract_strided_slice %1 {offsets = [0, 0], sizes = [128, 1], strides = [1, 1]} : vector<128x2xf32> to vector<128x1xf32>
    %3 = vector.extract_strided_slice %0 {offsets = [0, 0], sizes = [1, 128], strides = [1, 1]} : vector<2x128xf32> to vector<1x128xf32>
    %4 = vector.broadcast %2 : vector<128x1xf32> to vector<128x128xf32>
    %5 = vector.broadcast %3 : vector<1x128xf32> to vector<128x128xf32>
    %6 = arith.mulf %4, %5 : vector<128x128xf32>
    %7 = vector.extract_strided_slice %1 {offsets = [0, 1], sizes = [128, 1], strides = [1, 1]} : vector<128x2xf32> to vector<128x1xf32>
    %8 = vector.extract_strided_slice %0 {offsets = [1, 0], sizes = [1, 128], strides = [1, 1]} : vector<2x128xf32> to vector<1x128xf32>
    %9 = vector.broadcast %7 : vector<128x1xf32> to vector<128x128xf32>
    %10 = vector.broadcast %8 : vector<1x128xf32> to vector<128x128xf32>
    %11 = arith.mulf %9, %10 : vector<128x128xf32>
    %12 = arith.addf %6, %11 : vector<128x128xf32>
    %c0_3 = arith.constant 0 : index
    %c0_4 = arith.constant 0 : index
    %13 = vector.load %arg3[%c0_3, %c0_4] : memref<128x1xf32, #tpu.memory_space<vmem>>, vector<128x1xf32>
    %14 = vector.broadcast %13 : vector<128x1xf32> to vector<128x128xf32>
    %15 = arith.addf %12, %14 : vector<128x128xf32>
    %cst = arith.constant 0.000000e+00 : f32
    %16 = vector.broadcast %cst : f32 to vector<128x128xf32>
    %17 = arith.maximumf %15, %16 : vector<128x128xf32>
    %c0_5 = arith.constant 0 : index
    %c0_6 = arith.constant 0 : index
    %18 = vector.load %arg4[%c0_5, %c0_6] : memref<128x128xbf16, #tpu.memory_space<vmem>>, vector<128x128xbf16>
    %19 = arith.truncf %17 : vector<128x128xf32> to vector<128x128xbf16>
    %cst_7 = arith.constant dense<0.000000e+00> : vector<128x128xf32>
    %20 = tpu.matmul %18, %19, %cst_7 {dimension_numbers = #tpu.dot_dimension_numbers<[1], [0], [0], [1], [0, 0, 1, 1], [], []>} : vector<128x128xbf16>, vector<128x128xbf16>, vector<128x128xf32> -> vector<128x128xf32>
    %c0_8 = arith.constant 0 : index
    %c0_9 = arith.constant 0 : index
    %21 = vector.load %arg5[%c0_8, %c0_9] : memref<128x1xf32, #tpu.memory_space<vmem>>, vector<128x1xf32>
    %22 = vector.broadcast %21 : vector<128x1xf32> to vector<128x128xf32>
    %23 = arith.addf %20, %22 : vector<128x128xf32>
    %cst_10 = arith.constant 0.000000e+00 : f32
    %24 = vector.broadcast %cst_10 : f32 to vector<128x128xf32>
    %25 = arith.maximumf %23, %24 : vector<128x128xf32>
    %c0_11 = arith.constant 0 : index
    %c0_12 = arith.constant 0 : index
    %26 = vector.load %arg6[%c0_11, %c0_12] : memref<8x128xbf16, #tpu.memory_space<vmem>>, vector<8x128xbf16>
    %27 = arith.truncf %25 : vector<128x128xf32> to vector<128x128xbf16>
    %cst_13 = arith.constant dense<0.000000e+00> : vector<8x128xf32>
    %28 = tpu.matmul %26, %27, %cst_13 {dimension_numbers = #tpu.dot_dimension_numbers<[1], [0], [0], [1], [0, 0, 1, 1], [], []>} : vector<8x128xbf16>, vector<128x128xbf16>, vector<8x128xf32> -> vector<8x128xf32>
    %c0_14 = arith.constant 0 : index
    %c0_15 = arith.constant 0 : index
    %29 = vector.load %arg7[%c0_14, %c0_15] : memref<8x1xf32, #tpu.memory_space<vmem>>, vector<8x1xf32>
    %30 = vector.broadcast %29 : vector<8x1xf32> to vector<8x128xf32>
    %31 = arith.addf %28, %30 : vector<8x128xf32>
    %c0_16 = arith.constant 0 : index
    %c0_17 = arith.constant 0 : index
    %32 = vector.load %arg8[%c0_16, %c0_17] : memref<8x128xf32, #tpu.memory_space<vmem>>, vector<8x128xf32>
    tpu.vector_store %arg8[%c0_16, %c0_17], %31 {strides = array<i32>} : memref<8x128xf32, #tpu.memory_space<vmem>>, vector<8x128xf32>,
    return
  }
  func.func @transform_0(%arg0: i32) -> (i32, i32) {
    %c0_i32 = arith.constant 0 : i32
    %c0_i32_0 = arith.constant 0 : i32
    return %c0_i32, %arg0 : i32, i32
  }
  func.func @transform_1(%arg0: i32) -> (i32, i32) {
    %c0_i32 = arith.constant 0 : i32
    %c0_i32_0 = arith.constant 0 : i32
    %c0_i32_1 = arith.constant 0 : i32
    return %c0_i32, %c0_i32_0 : i32, i32
  }
  func.func @transform_2(%arg0: i32) -> (i32, i32) {
    %c0_i32 = arith.constant 0 : i32
    %c0_i32_0 = arith.constant 0 : i32
    %c0_i32_1 = arith.constant 0 : i32
    return %c0_i32, %c0_i32_0 : i32, i32
  }
  func.func @transform_3(%arg0: i32) -> (i32, i32) {
    %c0_i32 = arith.constant 0 : i32
    %c0_i32_0 = arith.constant 0 : i32
    %c0_i32_1 = arith.constant 0 : i32
    return %c0_i32, %c0_i32_0 : i32, i32
  }
  func.func @transform_4(%arg0: i32) -> (i32, i32) {
    %c0_i32 = arith.constant 0 : i32
    %c0_i32_0 = arith.constant 0 : i32
    %c0_i32_1 = arith.constant 0 : i32
    return %c0_i32, %c0_i32_0 : i32, i32
  }
  func.func @transform_5(%arg0: i32) -> (i32, i32) {
    %c0_i32 = arith.constant 0 : i32
    %c0_i32_0 = arith.constant 0 : i32
    %c0_i32_1 = arith.constant 0 : i32
    return %c0_i32, %c0_i32_0 : i32, i32
  }
  func.func @transform_6(%arg0: i32) -> (i32, i32) {
    %c0_i32 = arith.constant 0 : i32
    %c0_i32_0 = arith.constant 0 : i32
    %c0_i32_1 = arith.constant 0 : i32
    return %c0_i32, %c0_i32_0 : i32, i32
  }
  func.func @transform_7(%arg0: i32) -> (i32, i32) {
    %c0_i32 = arith.constant 0 : i32
    %c0_i32_0 = arith.constant 0 : i32
    return %c0_i32, %arg0 : i32, i32
  }
}

</mosaic_0001>

<bundles_post_ra>
// kernel: tpu_custom_call.1
= control target key start
LH: loop header
LB: loop body
LE: loop exit
PB: predicated region body
PF: predicated region fallthrough
CT: control target
= control target key end

     0   :  { %v862_v2 = vmov 1   ;;  %v863_v7 = vmov 0   ;;  %s1185_s0 = inlined_call_operand.vmem [shape: f32[2,128], index: 0, kind: input, shape index: {}]   ;;  %s1186_s1 = inlined_call_operand.vmem [shape: f32[128,2], index: 1, kind: input, shape index: {}]   ;;  %s1187_s2 = inlined_call_operand.vmem [shape: f32[128,1], index: 2, kind: input, shape index: {}]   ;;  %s1188_s3 = inlined_call_operand.vmem [shape: bf16[128,128], index: 3, kind: input, shape index: {}]   ;;  %s1189_s4 = inlined_call_operand.vmem [shape: f32[128,1], index: 4, kind: input, shape index: {}]   ;;  %s1190_s5 = inlined_call_operand.vmem [shape: bf16[8,128], index: 5, kind: input, shape index: {}]   ;;  %s1191_s6 = inlined_call_operand.vmem [shape: f32[8,1], index: 6, kind: input, shape index: {}]   ;;  %s1192_s7 = inlined_call_operand.hbm [shape: f32[8,128], index: 7, kind: output, shape index: {}]  }
   0x1   :  { %v43_v0 = vld [vmem:[%s1186_s1 + $0x70] sm:$0xff]  ;;  %v41_v1 = vld [vmem:[%s1186_s1 + $0x60] sm:$0xff]  ;;  %816 = vset.pattern.permute.xlu0 %v862_v2  ;;  %814 = vset.pattern.permute.xlu1 %v862_v2  ;;  %v44_v3 = vld [vmem:[%s1186_s1 + $0x78] sm:$0xff] }
   0x2   :  { %202 = vperm.xlu1 %814, %v43_v0   ;;  %194 = vperm.xlu0 %816, %v41_v1   ;;  %v39_v4 = vld [vmem:[%s1186_s1 + $0x50] sm:$0xff]  ;;  %v37_v5 = vld [vmem:[%s1186_s1 + $0x40] sm:$0xff]  ;;  %v42_v6 = vld [vmem:[%s1186_s1 + $0x68] sm:$0xff] }
   0x3   :  { %v35_v8 = vld [vmem:[%s1186_s1 + $0x30] sm:$0xff]  ;;  %v33_v9 = vld [vmem:[%s1186_s1 + $0x20] sm:$0xff] }
   0x4   :  { %v259_v10 = vld [vmem:[%s1187_s2 + $0x70] sm:$0xff] }
   0x5   :  { %v941_v11 = vld [vmem:[%s1186_s1 + $0x10] sm:$0xff] }
   0x6   :  { %206 = vperm.xlu1 %814, %v44_v3   ;;  %186 = vperm.xlu0 %816, %v39_v4  }
   0xa   :  { %815 = vset.pattern.permute.xlu1 %v863_v7  ;;  %178 = vperm.xlu0 %816, %v37_v5  }
   0xb   :  { %112 = vperm.xlu1 %815, %v42_v6  }
   0xe   :  { %170 = vperm.xlu0 %816, %v35_v8  }
   0xf   :  { %817 = vset.pattern.permute.xlu1 %v862_v2 }
  0x10   :  { %198 = vperm.xlu1 %817, %v42_v6  }
  0x12   :  { %162 = vperm.xlu0 %816, %v33_v9  }
  0x14   :  { %818 = vset.pattern.permute.xlu1 %v863_v7 }
  0x15   :  { %12 = vsyncpa [#allocation3], 0  ;;  %333 = vperm.xlu1 %818, %v259_v10   ;;  %v948_v12 = vld [vmem:[%s1186_s1] sm:$0xff]  ;;  %v40_v13 = vld [vmem:[%s1186_s1 + $0x58] sm:$0xff]  ;;  %v125_v55 = vlaneseq  ;;  %vm865_vm0 = vmmov 0   ;;  %s866_s18 = smov [#allocation2]  }
  0x16   :  { %154 = vperm.xlu0 %816, %v941_v11   ;;  %v257_v14 = vld [vmem:[%s1187_s2 + $0x60] sm:$0xff]  ;;  %v260_v15 = vld [vmem:[%s1187_s2 + $0x78] sm:$0xff]  ;;  %v38_v16 = vld [vmem:[%s1186_s1 + $0x48] sm:$0xff]  ;;  %s716_s19 = sshll.u32 %s866_s18, 4  ;;  %s717_s19 = int_to_ptr.vmem [resolvable:$true] %s716_s19 }
  0x17   :  { %v258_v17 = vld [vmem:[%s1187_s2 + $0x68] sm:$0xff]  ;;  %v256_v18 = vld [vmem:[%s1187_s2 + $0x58] sm:$0xff]  ;;  %v255_v20 = vld [vmem:[%s1187_s2 + $0x50] sm:$0xff]  ;;  %v126_v59 = vshrl.u32 %v125_v55, 7  ;;  %s840_s20 = scalar_lea.vmem %s717_s19, 128  ;;  %p845_p1 = scmp.lt.s32.totalorder %s717_s19, %s717_s19 }
  0x18   :  { %v254_v19 = vld [vmem:[%s1187_s2 + $0x48] sm:$0xff]  ;;  %v252_v21 = vld [vmem:[%s1187_s2 + $0x38] sm:$0xff]  ;;  %v411_v25 = vld [vmem:[%s1189_s4 + $0x70] sm:$0xff]  ;;  %p841_p0 = scmp.ne.s32.totalorder %s717_s19, %s840_s20  ;;  %p846_p2 = scmp.lt.s32.totalorder %s840_s20, %s840_s20 }
  0x19   :  { %97 = vperm.xlu1 %818, %v39_v4   ;;  %v250_v22 = vld [vmem:[%s1187_s2 + $0x28] sm:$0xff]  ;;  %v36_v23 = vld [vmem:[%s1186_s1 + $0x38] sm:$0xff]  ;;  %v253_v26 = vld [vmem:[%s1187_s2 + $0x40] sm:$0xff]  ;;  %v211_v63 = vsub.s32 1, %v126_v59 }
  0x1a   :  { %146 = vperm.xlu0 %816, %v948_v12   ;;  %v248_v24 = vld [vmem:[%s1187_s2 + $0x18] sm:$0xff]  ;;  %v409_v27 = vld [vmem:[%s1189_s4 + $0x60] sm:$0xff]  ;;  %v407_v28 = vld [vmem:[%s1189_s4 + $0x50] sm:$0xff]  ;;  %p847_p3 = por %p846_p2, %p845_p1 }
  0x1b   :  { %v34_v29 = vld [vmem:[%s1186_s1 + $0x28] sm:$0xff]  ;;  %v405_v30 = vld [vmem:[%s1189_s4 + $0x40] sm:$0xff]  ;;  %v403_v31 = vld [vmem:[%s1189_s4 + $0x30] sm:$0xff] }
  0x1c   :  { %v401_v32 = vld [vmem:[%s1189_s4 + $0x20] sm:$0xff]  ;;  %v251_v33 = vld [vmem:[%s1187_s2 + $0x30] sm:$0xff]  ;;  %v32_v36 = vld [vmem:[%s1186_s1 + $0x18] sm:$0xff]  ;;  %p848_p4 = pnand %p847_p3, %p841_p0 }
  0x1d   :  { %102 = vperm.xlu1 %818, %v40_v13   ;;  %v399_v34 = vld [vmem:[%s1189_s4 + $0x10] sm:$0xff]  ;;  %v397_v35 = vld [vmem:[%s1189_s4] sm:$0xff]  ;;  %v30_v39 = vld [vmem:[%s1186_s1 + $0x8] sm:$0xff] }
  0x1e   :  { %829 = vset.pattern.permute.xlu0 %v863_v7  ;;  %v663_v37 = vld [vmem:[%s1191_s6] sm:$0xff]  ;;  %v247_v42 = vld [vmem:[%s1187_s2 + $0x10] sm:$0xff]  ;;  %v246_v48 = vld [vmem:[%s1187_s2 + $0x8] sm:$0xff] }
  0x1f   :  { %117 = vperm.xlu0 %829, %v43_v0   ;;  %v249_v38 = vld [vmem:[%s1187_s2 + $0x20] sm:$0xff]  ;;  %v412_v50 = vld [vmem:[%s1189_s4 + $0x78] sm:$0xff]  ;;  %v410_v54 = vld [vmem:[%s1189_s4 + $0x68] sm:$0xff]  ;;  %v127_v0 = vsub.s32 0, %v126_v59 }
  0x20   :  { %v245_v45 = vld [vmem:[%s1187_s2] sm:$0xff]  ;;  %v408_v58 = vld [vmem:[%s1189_s4 + $0x58] sm:$0xff]  ;;  %v406_v62 = vld [vmem:[%s1189_s4 + $0x48] sm:$0xff] }
  0x21   :  { %819 = vset.pattern.permute.xlu1 %v862_v2  ;;  %v832_v52 = vld [vmem:[%s1188_s3] sm:$0xff]   ;;  %v404_v4 = vld [vmem:[%s1189_s4 + $0x38] sm:$0xff]  ;;  %v402_v10 = vld [vmem:[%s1189_s4 + $0x28] sm:$0xff] }
  0x22   :  { %190 = vperm.xlu1 %819, %v40_v13   ;;  %773 = vmatprep.mubr.bf16.mxu0 %v832_v52 }
  0x23   :  { %122 = vperm.xlu0 %829, %v44_v3  }
  0x26   :  { %820 = vset.pattern.permute.xlu1 %v863_v7 }
  0x27   :  { %323 = vperm.xlu1 %820, %v257_v14   ;;  %107 = vperm.xlu0 %829, %v41_v1   ;;  %v28_v1 = vld [vmem:[%s1185_s0] sm:$0x3] }
  0x28   :  { %v1091_v6 = vrot.slane %v28_v1, %v127_v0 }
  0x2b   :  { %87 = vperm.xlu1 %820, %v37_v5   ;;  %338 = vperm.xlu0 %829, %v260_v15   ;;  %v1089_v5 = vrot.slane %v28_v1, %v211_v63 }
  0x2f   :  { %92 = vperm.xlu1 %820, %v38_v16   ;;  %328 = vperm.xlu0 %829, %v258_v17   ;;  %v400_v17 = vld [vmem:[%s1189_s4 + $0x18] sm:$0xff] }
  0x33   :  { %821 = vset.pattern.permute.xlu1 %v862_v2  ;;  %318 = vperm.xlu0 %829, %v256_v18  }
  0x34   :  { %182 = vperm.xlu1 %821, %v38_v16  }
  0x37   :  { %308 = vperm.xlu0 %829, %v254_v19  }
  0x38   :  { %822 = vset.pattern.permute.xlu1 %v863_v7 }
  0x39   :  { %313 = vperm.xlu1 %822, %v255_v20  }
  0x3b   :  { %298 = vperm.xlu0 %829, %v252_v21  }
  0x3d   :  { %77 = vperm.xlu1 %822, %v35_v8  }
  0x3f   :  { %288 = vperm.xlu0 %829, %v250_v22  }
  0x41   :  { %82 = vperm.xlu1 %822, %v36_v23  }
  0x43   :  { %278 = vperm.xlu0 %829, %v248_v24  }
  0x45   :  { %823 = vset.pattern.permute.xlu1 %v862_v2 }
  0x46   :  { %174 = vperm.xlu1 %823, %v36_v23  }
  0x47   :  { %485 = vperm.xlu0 %829, %v411_v25  }
  0x4a   :  { %824 = vset.pattern.permute.xlu1 %v863_v7 }
  0x4b   :  { %303 = vperm.xlu1 %824, %v253_v26   ;;  %475 = vperm.xlu0 %829, %v409_v27   ;;  %v398_v26 = vld [vmem:[%s1189_s4 + $0x8] sm:$0xff] }
  0x4f   :  { %67 = vperm.xlu1 %824, %v33_v9   ;;  %465 = vperm.xlu0 %829, %v407_v28  }
  0x53   :  { %72 = vperm.xlu1 %824, %v34_v29   ;;  %455 = vperm.xlu0 %829, %v405_v30  }
  0x57   :  { %825 = vset.pattern.permute.xlu1 %v862_v2  ;;  %445 = vperm.xlu0 %829, %v403_v31  }
  0x58   :  { %166 = vperm.xlu1 %825, %v34_v29  }
  0x5b   :  { %435 = vperm.xlu0 %829, %v401_v32  }
  0x5c   :  { %826 = vset.pattern.permute.xlu1 %v863_v7 }
  0x5d   :  { %293 = vperm.xlu1 %826, %v251_v33  }
  0x5f   :  { %425 = vperm.xlu0 %829, %v399_v34  }
  0x61   :  { %57 = vperm.xlu1 %826, %v941_v11  }
  0x63   :  { %415 = vperm.xlu0 %829, %v397_v35  }
  0x65   :  { %62 = vperm.xlu1 %826, %v32_v36  }
  0x67   :  { %666 = vperm.xlu0 %829, %v663_v37  }
  0x69   :  { %827 = vset.pattern.permute.xlu1 %v862_v2 }
  0x6a   :  { %158 = vperm.xlu1 %827, %v32_v36  }
  0x6e   :  { %828 = vset.pattern.permute.xlu1 %v863_v7 }
  0x6f   :  { %283 = vperm.xlu1 %828, %v249_v38  }
  0x73   :  { %47 = vperm.xlu1 %828, %v948_v12  }
  0x77   :  { %52 = vperm.xlu1 %828, %v30_v39  }
  0x7b   :  { %830 = vset.pattern.permute.xlu1 %v862_v2 }
  0x7c   :  { %150 = vperm.xlu1 %830, %v30_v39  }
  0x7d   :  { %v203_v40 = vpop.permute.xlu1 %202  ;;  %v195_v41 = vpop.permute.xlu0 %194 }
  0x7e   :  { %v227_v11 = vmul.f32 %v1089_v5, %v203_v40  ;;  %v225_v12 = vmul.f32 %v1089_v5, %v195_v41 }
  0x80   :  { %831 = vset.pattern.permute.xlu1 %v863_v7 }
  0x81   :  { %v207_v43 = vpop.permute.xlu1 %206  ;;  %273 = vperm.xlu1 %831, %v247_v42   ;;  %v1050_v44 = vpop.permute.xlu0 %186 }
  0x82   :  { %v228_v18 = vmul.f32 %v1089_v5, %v207_v43  ;;  %v223_v40 = vmul.f32 %v1089_v5, %v1050_v44 }
  0x85   :  { %263 = vperm.xlu1 %831, %v245_v45   ;;  %v1055_v46 = vpop.permute.xlu0 %178 }
  0x86   :  { %v113_v47 = vpop.permute.xlu1 %112  ;;  %v221_v63 = vmul.f32 %v1089_v5, %v1055_v46 }
  0x87   :  { %v142_v27 = vmul.f32 %v1091_v6, %v113_v47 }
  0x89   :  { %268 = vperm.xlu1 %831, %v246_v48   ;;  %v1060_v49 = vpop.permute.xlu0 %170 }
  0x8b   :  { %v199_v51 = vpop.permute.xlu1 %198 }
  0x8c   :  { %v226_v20 = vmul.f32 %v1089_v5, %v199_v51 }
  0x8d   :  { %490 = vperm.xlu1 %831, %v412_v50   ;;  %v1068_v53 = vpop.permute.xlu0 %162 }
  0x8e   :  { %v242_v31 = vadd.f32 %v226_v20, %v142_v27 }
  0x90   :  { %v334_v56 = vpop.permute.xlu1 %333 }
  0x91   :  { %480 = vperm.xlu1 %831, %v410_v54   ;;  %v1073_v57 = vpop.permute.xlu0 %154 }
  0x94   :  { %v98_v60 = vpop.permute.xlu1 %97 }
  0x95   :  { %470 = vperm.xlu1 %831, %v408_v58   ;;  %v1078_v61 = vpop.permute.xlu0 %146  ;;  %v139_v41 = vmul.f32 %v1091_v6, %v98_v60 }
  0x97   :  { %v239_v51 = vadd.f32 %v223_v40, %v139_v41 }
  0x98   :  { %v103_v2 = vpop.permute.xlu1 %102 }
  0x99   :  { %460 = vperm.xlu1 %831, %v406_v62   ;;  %v140_v42 = vmul.f32 %v1091_v6, %v103_v2 }
  0x9a   :  { %v118_v3 = vpop.permute.xlu0 %117 }
  0x9b   :  { %v143_v7 = vmul.f32 %v1091_v6, %v118_v3 }
  0x9d   :  { %v191_v8 = vpop.permute.xlu1 %190  ;;  %450 = vperm.xlu1 %831, %v404_v4   ;;  %v243_v13 = vadd.f32 %v227_v11, %v143_v7 }
  0x9e   :  { %v123_v9 = vpop.permute.xlu0 %122  ;;  %v224_v37 = vmul.f32 %v1089_v5, %v191_v8 }
  0x9f   :  { %v144_v14 = vmul.f32 %v1091_v6, %v123_v9  ;;  %v355_v23 = vadd.f32 %v334_v56, %v243_v13 }
  0xa0   :  { %v240_v48 = vadd.f32 %v224_v37, %v140_v42 }
  0xa1   :  { %440 = vperm.xlu1 %831, %v402_v10   ;;  %v244_v22 = vadd.f32 %v228_v18, %v144_v14  ;;  %v371_v32 = vmax.f32 %v355_v23, 0.0 }
  0xa2   :  { %v324_v15 = vpop.permute.xlu1 %323  ;;  %v108_v16 = vpop.permute.xlu0 %107 }
  0xa3   :  { %v141_v19 = vmul.f32 %v1091_v6, %v108_v16  ;;  %v219_v16 = vmul.f32 %v1089_v5, %v1060_v49 }
  0xa5   :  { %v241_v21 = vadd.f32 %v225_v12, %v141_v19  ;;  %430 = vperm.xlu1 %831, %v400_v17  }
  0xa6   :  { %v88_v24 = vpop.permute.xlu1 %87  ;;  %v339_v25 = vpop.permute.xlu0 %338 }
  0xa7   :  { %v356_v28 = vadd.f32 %v339_v25, %v244_v22  ;;  %v353_v29 = vadd.f32 %v324_v15, %v241_v21  ;;  %v137_v0 = vmul.f32 %v1091_v6, %v88_v24 }
  0xa9   :  { %v372_v30 = vmax.f32 %v356_v28, 0.0  ;;  %420 = vperm.xlu1 %831, %v398_v26   ;;  %v369_v38 = vmax.f32 %v353_v29, 0.0  ;;  %v237_v7 = vadd.f32 %v221_v63, %v137_v0 }
  0xaa   :  { %v93_v33 = vpop.permute.xlu1 %92  ;;  %v329_v34 = vpop.permute.xlu0 %328 }
  0xab   :  { %v354_v35 = vadd.f32 %v329_v34, %v242_v31  ;;  %v396_v36 = vpack.c.bf16 %v372_v30, %v371_v32  ;;  %v138_v62 = vmul.f32 %v1091_v6, %v93_v33  ;;  %v217_v34 = vmul.f32 %v1089_v5, %v1068_v53 }
  0xad   :  { %v370_v39 = vmax.f32 %v354_v35, 0.0  ;;  %757 = vmatprep.subr.bf16.mxu0 %v396_v36 }
  0xae   :  { %758 = vmatpush3.bf16.msra.mxu0 %v396_v36  ;;  %v319_v47 = vpop.permute.xlu0 %318 }
  0xaf   :  { %v395_v43 = vpack.c.bf16 %v370_v39, %v369_v38  ;;  %v183_v45 = vpop.permute.xlu1 %182  ;;  %v352_v50 = vadd.f32 %v319_v47, %v240_v48 }
  0xb0   :  { %v222_v60 = vmul.f32 %v1089_v5, %v183_v45 }
  0xb1   :  { %759 = vmatprep.subr.bf16.mxu0 %v395_v43  ;;  %v368_v55 = vmax.f32 %v352_v50, 0.0 }
  0xb2   :  { %760 = vmatpush3.bf16.msra.mxu0 %v395_v43  ;;  %v238_v1 = vadd.f32 %v222_v60, %v138_v62  ;;  %v309_v3 = vpop.permute.xlu0 %308  ;;  %v213_v60 = vmul.f32 %v1089_v5, %v1078_v61  ;;  %v833_v61 = vld [vmem:[%s1188_s3 + $0x8] sm:$0xff]  }
  0xb4   :  { %v314_v52 = vpop.permute.xlu1 %313  ;;  %v350_v4 = vadd.f32 %v309_v3, %v238_v1 }
  0xb5   :  { %v351_v54 = vadd.f32 %v314_v52, %v239_v51  ;;  %v215_v52 = vmul.f32 %v1089_v5, %v1073_v57 }
  0xb6   :  { %v366_v10 = vmax.f32 %v350_v4, 0.0  ;;  %v299_v20 = vpop.permute.xlu0 %298 }
  0xb7   :  { %v367_v56 = vmax.f32 %v351_v54, 0.0 }
  0xb8   :  { %v78_v58 = vpop.permute.xlu1 %77 }
  0xb9   :  { %v394_v59 = vpack.c.bf16 %v368_v55, %v367_v56  ;;  %v135_v17 = vmul.f32 %v1091_v6, %v78_v58 }
  0xba   :  { %v289_v35 = vpop.permute.xlu0 %288 }
  0xbb   :  { %761 = vmatprep.subr.bf16.mxu0 %v394_v59  ;;  %v235_v22 = vadd.f32 %v219_v16, %v135_v17  ;;  %v864_v16 = vmov 0.0  }
  0xbc   :  { %v83_v44 = vpop.permute.xlu1 %82  ;;  %762 = vmatpush3.bf16.msra.mxu0 %v394_v59  ;;  %789 = vmatprep.subr.bf16.mxu1 %v864_v16 }
  0xbd   :  { %v136_v46 = vmul.f32 %v1091_v6, %v83_v44  ;;  %805 = vmatprep.mubr.msk.bf16.mxu1 %vm865_vm0, %v864_v16 }
  0xbe   :  { %v279_v54 = vpop.permute.xlu0 %278 }
  0xc1   :  { %v175_v2 = vpop.permute.xlu1 %174 }
  0xc2   :  { %v220_v15 = vmul.f32 %v1089_v5, %v175_v2 }
  0xc4   :  { %v236_v18 = vadd.f32 %v220_v15, %v136_v46  ;;  %v838_v15 = vld [vmem:[%s1188_s3 + $0x30] sm:$0xff]   ;;  %v839_v46 = vld [vmem:[%s1188_s3 + $0x38] sm:$0xff]  }
  0xc6   :  { %v304_v8 = vpop.permute.xlu1 %303  ;;  %v348_v21 = vadd.f32 %v299_v20, %v236_v18 }
  0xc7   :  { %v349_v9 = vadd.f32 %v304_v8, %v237_v7 }
  0xc8   :  { %v364_v26 = vmax.f32 %v348_v21, 0.0 }
  0xc9   :  { %v365_v11 = vmax.f32 %v349_v9, 0.0 }
  0xca   :  { %v68_v12 = vpop.permute.xlu1 %67 }
  0xcb   :  { %v393_v13 = vpack.c.bf16 %v366_v10, %v365_v11  ;;  %v133_v31 = vmul.f32 %v1091_v6, %v68_v12 }
  0xcd   :  { %763 = vmatprep.subr.bf16.mxu0 %v393_v13  ;;  %v233_v37 = vadd.f32 %v217_v34, %v133_v31 }
  0xce   :  { %v73_v14 = vpop.permute.xlu1 %72  ;;  %764 = vmatpush3.bf16.msra.mxu0 %v393_v13  ;;  %v836_v13 = vld [vmem:[%s1188_s3 + $0x20] sm:$0xff]  }
  0xcf   :  { %v134_v49 = vmul.f32 %v1091_v6, %v73_v14  ;;  %v837_v14 = vld [vmem:[%s1188_s3 + $0x28] sm:$0xff]  }
  0xd3   :  { %v167_v19 = vpop.permute.xlu1 %166 }
  0xd4   :  { %v218_v30 = vmul.f32 %v1089_v5, %v167_v19 }
  0xd6   :  { %v234_v32 = vadd.f32 %v218_v30, %v134_v49 }
  0xd8   :  { %v294_v23 = vpop.permute.xlu1 %293  ;;  %v346_v36 = vadd.f32 %v289_v35, %v234_v32 }
  0xd9   :  { %v347_v24 = vadd.f32 %v294_v23, %v235_v22 }
  0xda   :  { %v362_v41 = vmax.f32 %v346_v36, 0.0 }
  0xdb   :  { %v363_v25 = vmax.f32 %v347_v24, 0.0  ;;  %v486_v24 = vpop.permute.xlu0 %485 }
  0xdc   :  { %v58_v27 = vpop.permute.xlu1 %57 }
  0xdd   :  { %v392_v28 = vpack.c.bf16 %v364_v26, %v363_v25  ;;  %v131_v50 = vmul.f32 %v1091_v6, %v58_v27 }
  0xdf   :  { %765 = vmatprep.subr.bf16.mxu0 %v392_v28  ;;  %v231_v56 = vadd.f32 %v215_v52, %v131_v50 }
  0xe0   :  { %v63_v29 = vpop.permute.xlu1 %62  ;;  %766 = vmatpush3.bf16.msra.mxu0 %v392_v28 }
  0xe1   :  { %v132_v48 = vmul.f32 %v1091_v6, %v63_v29  ;;  %v476_v29 = vpop.permute.xlu0 %475 }
  0xe5   :  { %v159_v33 = vpop.permute.xlu1 %158 }
  0xe6   :  { %v216_v47 = vmul.f32 %v1089_v5, %v159_v33  ;;  %v466_v33 = vpop.permute.xlu0 %465 }
  0xe8   :  { %v232_v51 = vadd.f32 %v216_v47, %v132_v48 }
  0xea   :  { %v284_v38 = vpop.permute.xlu1 %283  ;;  %v344_v55 = vadd.f32 %v279_v54, %v232_v51 }
  0xeb   :  { %v345_v39 = vadd.f32 %v284_v38, %v233_v37 }
  0xec   :  { %v360_v0 = vmax.f32 %v344_v55, 0.0 }
  0xed   :  { %v361_v40 = vmax.f32 %v345_v39, 0.0 }
  0xee   :  { %v48_v42 = vpop.permute.xlu1 %47 }
  0xef   :  { %v391_v43 = vpack.c.bf16 %v362_v41, %v361_v40  ;;  %v129_v59 = vmul.f32 %v1091_v6, %v48_v42  ;;  %v456_v40 = vpop.permute.xlu0 %455 }
  0xf1   :  { %767 = vmatprep.subr.bf16.mxu0 %v391_v43  ;;  %v229_v4 = vadd.f32 %v213_v60, %v129_v59 }
  0xf2   :  { %v53_v45 = vpop.permute.xlu1 %52  ;;  %768 = vmatpush3.bf16.msra.mxu0 %v391_v43 }
  0xf3   :  { %v130_v2 = vmul.f32 %v1091_v6, %v53_v45  ;;  %v835_v6 = vld [vmem:[%s1188_s3 + $0x18] sm:$0xff]   ;;  %v446_v55 = vpop.permute.xlu0 %445 }
  0xf7   :  { %v151_v53 = vpop.permute.xlu1 %150 }
  0xf8   :  { %v214_v62 = vmul.f32 %v1089_v5, %v151_v53  ;;  %v834_v5 = vld [vmem:[%s1188_s3 + $0x10] sm:$0xff]  }
  0xfa   :  { %v230_v7 = vadd.f32 %v214_v62, %v130_v2  ;;  %v436_v2 = vpop.permute.xlu0 %435 }
  0xfc   :  { %v274_v58 = vpop.permute.xlu1 %273 }
  0xfd   :  { %v343_v44 = vadd.f32 %v274_v58, %v231_v56 }
  0xff   :  { %v359_v63 = vmax.f32 %v343_v44, 0.0 }
 0x100   :  { %v264_v1 = vpop.permute.xlu1 %263 }
 0x101   :  { %v390_v3 = vpack.c.bf16 %v360_v0, %v359_v63  ;;  %v341_v57 = vadd.f32 %v264_v1, %v229_v4 }
 0x103   :  { %769 = vmatprep.subr.bf16.mxu0 %v390_v3  ;;  %v357_v10 = vmax.f32 %v341_v57, 0.0 }
 0x104   :  { %v269_v8 = vpop.permute.xlu1 %268  ;;  %770 = vmatpush3.bf16.msra.mxu0 %v390_v3 }
 0x105   :  { %v342_v9 = vadd.f32 %v269_v8, %v230_v7 }
 0x107   :  { %v358_v11 = vmax.f32 %v342_v9, 0.0 }
 0x108   :  { %v491_v22 = vpop.permute.xlu1 %490 }
 0x109   :  { %v389_v12 = vpack.c.bf16 %v358_v11, %v357_v10 }
 0x10b   :  { %771 = vmatprep.subr.bf16.mxu0 %v389_v12 }
 0x10c   :  { %772 = vmatpush3.bf16.msra.mxu0 %v389_v12  ;;  %v481_v27 = vpop.permute.xlu1 %480  ;;  %v426_v12 = vpop.permute.xlu0 %425 }
 0x10f   :  { %774 = vmatmul.mubr.bf16.vlgmr.msra.gmra.mxu0 %v833_v61 }
 0x110   :  { %777 = vmatprep.mubr.bf16.mxu0 %v834_v5  ;;  %v471_v31 = vpop.permute.xlu1 %470 }
 0x114   :  { %v461_v37 = vpop.permute.xlu1 %460 }
 0x117   :  { %778 = vmatmul.mubr.bf16.gmra.mxu0 %v835_v6 }
 0x118   :  { %781 = vmatprep.mubr.bf16.mxu0 %v836_v13  ;;  %v451_v53 = vpop.permute.xlu1 %450 }
 0x11c   :  { %v441_v62 = vpop.permute.xlu1 %440 }
 0x11f   :  { %782 = vmatmul.mubr.bf16.gmra.mxu0 %v837_v14 }
 0x120   :  { %785 = vmatprep.mubr.bf16.mxu0 %v838_v15  ;;  %v431_v9 = vpop.permute.xlu1 %430 }
 0x124   :  { %v421_v15 = vpop.permute.xlu1 %420 }
 0x127   :  { %786 = vmatmul.mubr.bf16.gmra.mxu0 %v839_v46 }
 0x1cf   :  { %v1163_v17 = vpop.f32.mrf.mxu0 }
 0x1d0   :  { %v584_v13 = vadd.f32 %v1163_v17, %v426_v12 }
 0x1d1   :  { %v1165_v18 = vpop.f32.mrf.mxu0 }
 0x1d3   :  { %v776_v19 = vpop.f32.mrf.mxu0 }
 0x1d4   :  { %v587_v61 = vadd.f32 %v776_v19, %v431_v9 }
 0x1d5   :  { %v1167_v20 = vpop.f32.mrf.mxu0 }
 0x1d6   :  { %v641_v46 = vmax.f32 %v587_v61, 0.0 }
 0x1d7   :  { %v779_v21 = vpop.f32.mrf.mxu0 }
 0x1d8   :  { %v600_v3 = vadd.f32 %v779_v21, %v446_v55  ;;  %v579_v21 = vadd.f32 %v1167_v20, %v421_v15  ;;  %v654_v20 = vld [vmem:[%s1190_s5] sm:$0xf] }
 0x1d9   :  { %v591_v23 = vpop.f32.mrf.mxu0 }
 0x1da   :  { %v644_v10 = vmax.f32 %v600_v3, 0.0  ;;  %v592_v11 = vadd.f32 %v591_v23, %v436_v2  ;;  %v640_v23 = vmax.f32 %v584_v13, 0.0 }
 0x1db   :  { %v780_v25 = vpop.f32.mrf.mxu0 }
 0x1dc   :  { %v603_v63 = vadd.f32 %v780_v25, %v451_v53  ;;  %v642_v14 = vmax.f32 %v592_v11, 0.0  ;;  %v656_v19 = vpack.c.bf16 %v641_v46, %v640_v23 }
 0x1dd   :  { %v594_v26 = vpop.f32.mrf.mxu0 }
 0x1de   :  { %v645_v57 = vmax.f32 %v603_v63, 0.0  ;;  %v595_v7 = vadd.f32 %v594_v26, %v441_v62  ;;  %v639_v26 = vmax.f32 %v579_v21, 0.0 }
 0x1df   :  { %v783_v28 = vpop.f32.mrf.mxu0 }
 0x1e0   :  { %v616_v52 = vadd.f32 %v783_v28, %v466_v33  ;;  %v658_v5 = vpack.c.bf16 %v645_v57, %v644_v10  ;;  %v643_v6 = vmax.f32 %v595_v7, 0.0 }
 0x1e1   :  { %v607_v30 = vpop.f32.mrf.mxu0 }
 0x1e2   :  { %v648_v44 = vmax.f32 %v616_v52, 0.0  ;;  %v608_v60 = vadd.f32 %v607_v30, %v456_v40 }
 0x1e3   :  { %v784_v49 = vpop.f32.mrf.mxu0 }
 0x1e4   :  { %v619_v48 = vadd.f32 %v784_v49, %v471_v31  ;;  %v646_v4 = vmax.f32 %v608_v60, 0.0 }
 0x1e5   :  { %v610_v32 = vpop.f32.mrf.mxu0 }
 0x1e6   :  { %v649_v56 = vmax.f32 %v619_v48, 0.0  ;;  %v611_v58 = vadd.f32 %v610_v32, %v461_v37 }
 0x1e7   :  { %v787_v34 = vpop.f32.mrf.mxu0 }
 0x1e8   :  { %v632_v36 = vadd.f32 %v787_v34, %v486_v24  ;;  %v660_v0 = vpack.c.bf16 %v649_v56, %v648_v44  ;;  %v647_v1 = vmax.f32 %v611_v58, 0.0  ;;  %v416_v24 = vpop.permute.xlu0 %415 }
 0x1e9   :  { %v623_v35 = vpop.f32.mrf.mxu0  ;;  %v576_v25 = vadd.f32 %v1165_v18, %v416_v24 }
 0x1ea   :  { %v652_v42 = vmax.f32 %v632_v36, 0.0  ;;  %v624_v43 = vadd.f32 %v623_v35, %v476_v29  ;;  %v659_v8 = vpack.c.bf16 %v647_v1, %v646_v4 }
 0x1eb   :  { %v788_v38 = vpop.f32.mrf.mxu0 }
 0x1ec   :  { %v635_v39 = vadd.f32 %v788_v38, %v491_v22  ;;  %v650_v54 = vmax.f32 %v624_v43, 0.0  ;;  %v657_v22 = vpack.c.bf16 %v643_v6, %v642_v14  ;;  %v667_v28 = vpop.permute.xlu0 %666 }
 0x1ed   :  { %v626_v41 = vpop.f32.mrf.mxu0 }
 0x1ee   :  { %v653_v45 = vmax.f32 %v635_v39, 0.0  ;;  %v627_v47 = vadd.f32 %v626_v41, %v481_v27  ;;  %v638_v27 = vmax.f32 %v576_v25, 0.0 }
 0x1f0   :  { %v651_v50 = vmax.f32 %v627_v47, 0.0  ;;  %v662_v51 = vpack.c.bf16 %v653_v45, %v652_v42  ;;  %v655_v17 = vpack.c.bf16 %v639_v26, %v638_v27 }
 0x1f2   :  { %790 = vmatpush3.bf16.msra.mxu1 %v662_v51  ;;  %v661_v59 = vpack.c.bf16 %v651_v50, %v650_v54 }
 0x1f3   :  { %791 = vmatprep.subr.bf16.mxu1 %v864_v16 }
 0x1f6   :  { %792 = vmatpush3.bf16.msra.mxu1 %v661_v59 }
 0x1f7   :  { %793 = vmatprep.subr.bf16.mxu1 %v864_v16 }
 0x1fa   :  { %794 = vmatpush3.bf16.msra.mxu1 %v660_v0 }
 0x1fb   :  { %795 = vmatprep.subr.bf16.mxu1 %v864_v16 }
 0x1fe   :  { %796 = vmatpush3.bf16.msra.mxu1 %v659_v8 }
 0x1ff   :  { %797 = vmatprep.subr.bf16.mxu1 %v864_v16 }
 0x202   :  { %798 = vmatpush3.bf16.msra.mxu1 %v658_v5 }
 0x203   :  { %799 = vmatprep.subr.bf16.mxu1 %v864_v16 }
 0x206   :  { %800 = vmatpush3.bf16.msra.mxu1 %v657_v22 }
 0x207   :  { %801 = vmatprep.subr.bf16.mxu1 %v864_v16 }
 0x20a   :  { %802 = vmatpush3.bf16.msra.mxu1 %v656_v19 }
 0x20b   :  { %803 = vmatprep.subr.bf16.mxu1 %v864_v16 }
 0x20e   :  { %804 = vmatpush3.bf16.msra.mxu1 %v655_v17 }
 0x211   :  { %806 = vmatmul.mubr.bf16.vlgmr.msra.gmra.mxu1 %v654_v20 }
 0x2d1   :  { %v703_v18 = vpop.f32.mrf.mxu1 }
 0x2d2   :  { %v704_v29 = vadd.f32 %v703_v18, %v667_v28 }
 0x2d3   :  { %v807_v30 = vpop.f32.mrf.mxu1 }
 0x2d4   :  { %709 = vst [vmem:[#allocation2] sm:$0xff] %v704_v29 }
 0x2d5   :  { %v706_v49 = vpop.f32.mrf.mxu1 }
 0x2d6   :  { %851 = shalt.err (!%p848_p4)
}
 0x2d7   :  { %719 = dma.vmem_to_hbm [thread:$0]  %s717_s19, 128, %s1192_s7, [#allocation3]   ;;  %v808_v16 = vpop.f32.mrf.mxu1 }
 0x2d8   :  { %860 = dma.done.wait [#allocation3], 128  }
 0x2d9   :  { %861 = vsyncadd [#allocation3], 4294967168 }
 0x2da   :  { %723 = vsyncpa [#allocation3], 1 }

</bundles_post_ra>
